<compile_context>
chip_gen: v7x
topology: tpu7x:2x2x1
jax: 0.10.0
libtpu: 0.0.40
codegen_flags: <defaults>
</compile_context>

<pallas_src>
import jax
import jax.numpy as jnp
from jax import lax
from jax.experimental import pallas as pl
from jax.experimental.pallas import tpu as pltpu


_VMEM = pl.BlockSpec(memory_space=pltpu.MemorySpace.VMEM)
_SMEM = pl.BlockSpec(memory_space=pltpu.MemorySpace.SMEM)


# -----------------------------------------------------------------------------
# Fused kernel (everything fits in VMEM at these sizes -> single-block kernel)
# -----------------------------------------------------------------------------

def _smf_fused_kernel(x_ref, wlin_ref, beta_ref, bias_ref,
                      w_mf_ref, h_mf_ref, h_mfh_ref, a_ref,
                      y_ref, xcat_ref):
    """Fused forward passes of the four smf sub-models.

    Inputs:
      x     : [N, D]      training data (X_train)
      wlin  : [HID, D]    Classification.linear_W.weight   (PyTorch [out, in])
      beta  : [O, HID]    linear_beta.weight               (PyTorch [out, in])
      bias  : [O]         linear_beta.bias                 (SMEM scalars)
      w_mf  : [D, HID]    MF.W  (== common_W used by MF_H.forward in fit())
      h_mf  : [HID, N]    MF.H
      h_mfh : [HID, N]    MF_H.H
      a     : [N, HID]    code matrix for Classification_beta

    Outputs:
      y_ref   : [2*O, N]  rows [0:O]  = sigmoid(linear_beta(linear_W(x)))^T
                          rows [O:2O] = sigmoid(linear_beta(a))^T
      xcat_ref: [D, 2*N]  cols [0:N]  = W_mf @ H_mf   (MF.forward)
                          cols [N:2N] = W_mf @ H_mfh  (MF_H.forward(W_mf))
    """
    o = beta_ref.shape[0]

    # ---- classification heads (lane-dense [*, N] orientation) ----------------
    # Parameter-only fold: w_comb^T[O, D] = Beta @ W_lin  (== (W_lin^T @ Beta^T)^T)
    w_comb_t = lax.dot_general(
        beta_ref[...], wlin_ref[...],
        dimension_numbers=(((1,), (0,)), ((), ())),
        preferred_element_type=jnp.float32)                       # [O, D]
    # logits^T[O, N] = w_comb^T @ x^T   (contract feature dim D)
    logits_cls_t = lax.dot_general(
        w_comb_t, x_ref[...],
        dimension_numbers=(((1,), (1,)), ((), ())),
        preferred_element_type=jnp.float32)                       # [O, N]
    # beta-only head: logits^T[O, N] = Beta @ a^T   (contract hidden dim)
    logits_beta_t = lax.dot_general(
        beta_ref[...], a_ref[...],
        dimension_numbers=(((1,), (1,)), ((), ())),
        preferred_element_type=jnp.float32)                       # [O, N]

    logits = jnp.concatenate([logits_cls_t, logits_beta_t], axis=0)  # [2O, N]

    if o == 1:
        bias_term = bias_ref[0]                                   # scalar splat from SMEM
    else:
        bias_term = jnp.stack(
            [bias_ref[i] for i in range(o)] * 2).reshape(2 * o, 1)
    y_ref[...] = jax.nn.sigmoid(logits + bias_term)

    # ---- matrix-factorization heads: ONE MXU pass sharing W_mf ---------------
    h_cat = jnp.concatenate([h_mf_ref[...], h_mfh_ref[...]], axis=1)  # [HID, 2N]
    xcat_ref[...] = jnp.dot(w_mf_ref[...], h_cat,
                            preferred_element_type=jnp.float32)       # [D, 2N]


# -----------------------------------------------------------------------------
# Wrapper
# -----------------------------------------------------------------------------

def smf_forward(x, linear_W_weight, linear_beta_weight, linear_beta_bias,
                W_mf, H_mf, H_mfh, a):
    """Fused forward of all four smf sub-models.

    Returns (y_hat [N,O], X_hat [D,N], X_hat1 [D,N], y_hat_beta [N,O]) with the
    same semantics as the PyTorch module forwards (MF and MF_H share W_mf, as
    in smf.fit()).
    """
    N, _ = x.shape
    O = linear_beta_weight.shape[0]
    D_mf = W_mf.shape[0]
    N_mf = H_mf.shape[1]
    assert H_mfh.shape == H_mf.shape

    y_pair, x_cat = pl.pallas_call(
        _smf_fused_kernel,
        out_shape=(jax.ShapeDtypeStruct((2 * O, N), jnp.float32),
                   jax.ShapeDtypeStruct((D_mf, 2 * N_mf), jnp.float32)),
        in_specs=[_VMEM, _VMEM, _VMEM, _SMEM, _VMEM, _VMEM, _VMEM, _VMEM],
        out_specs=(_VMEM, _VMEM),
    )(x, linear_W_weight, linear_beta_weight, linear_beta_bias,
      W_mf, H_mf, H_mfh, a)

    y_hat = y_pair[:O, :].T          # [N, O]  (pure reshape for O == 1)
    y_hat_beta = y_pair[O:, :].T     # [N, O]
    X_hat = x_cat[:, :N_mf]          # [D, N]  MF.forward()
    X_hat1 = x_cat[:, N_mf:]         # [D, N]  MF_H.forward(W_mf)
    return y_hat, X_hat, X_hat1, y_hat_beta


# -----------------------------------------------------------------------------
# Parameter init + driver
# -----------------------------------------------------------------------------

if __name__ == "__main__":
    # Small shapes consistent with the module:
    #   X_train: [N_samples, D_features]; hidden_size=4; output_size=1
    N, D, HID, OUT = 8, 32, 4, 1

    key = jax.random.PRNGKey(0)
    ks = jax.random.split(key, 8)

    # Training data (X_train analogue)
    X_train = jax.random.normal(ks[0], (N, D), dtype=jnp.float32)

    # Classification model params (nn.Linear conventions: weight is [out, in])
    linear_W_weight = jax.random.uniform(ks[1], (HID, D), dtype=jnp.float32) - 0.5
    linear_beta_weight = jax.random.uniform(ks[2], (OUT, HID), dtype=jnp.float32) - 0.5
    linear_beta_bias = jax.random.uniform(ks[3], (OUT,), dtype=jnp.float32) - 0.5

    # MF model params (built from X_train.T -> X:[D, N]):  W:[D,HID], H:[HID,N]
    W_mf = jnp.clip(jax.random.uniform(ks[4], (D, HID), dtype=jnp.float32), 1e-8, None)
    H_mf = jnp.clip(jax.random.uniform(ks[5], (HID, N), dtype=jnp.float32), 1e-8, None)

    # MF_H model param
    H_mfh = jnp.clip(jax.random.uniform(ks[6], (HID, N), dtype=jnp.float32), 1e-8, None)

    # Classification_beta input (a code matrix a:[N, HID])
    a_code = jax.random.normal(ks[7], (N, HID), dtype=jnp.float32)

    # --- run the fused kernel (jit so the wrapper slices fuse into one dispatch) ---
    fused = jax.jit(smf_forward)
    y_hat, X_hat, X_hat1, y_hat_beta = fused(
        X_train, linear_W_weight, linear_beta_weight, linear_beta_bias,
        W_mf, H_mf, H_mfh, a_code)
    jax.block_until_ready((y_hat, X_hat, X_hat1, y_hat_beta))

    # --- reference checks (plain JAX, mirrors the PyTorch forwards) ---
    ref_y = jax.nn.sigmoid((X_train @ linear_W_weight.T) @ linear_beta_weight.T
                           + linear_beta_bias)
    ref_X = W_mf @ H_mf
    ref_X1 = W_mf @ H_mfh
    ref_yb = jax.nn.sigmoid(a_code @ linear_beta_weight.T + linear_beta_bias)

    assert y_hat.shape == (N, OUT)
    assert y_hat_beta.shape == (N, OUT)
    assert X_hat.shape == (D, N)
    assert X_hat1.shape == (D, N)
    assert jnp.allclose(y_hat, ref_y, atol=1e-5)
    assert jnp.allclose(X_hat, ref_X, atol=1e-5)
    assert jnp.allclose(X_hat1, ref_X1, atol=1e-5)
    assert jnp.allclose(y_hat_beta, ref_yb, atol=1e-5)

    print("KERNEL_OK")
</pallas_src>

<mosaic_0001>
module attributes {stable_mosaic.version = 11 : i64} {
  func.func @_smf_fused_kernel(%arg0: memref<8x32xf32, #tpu.memory_space<vmem>>, %arg1: memref<4x32xf32, #tpu.memory_space<vmem>>, %arg2: memref<1x4xf32, #tpu.memory_space<vmem>>, %arg3: memref<1xf32, #tpu.memory_space<smem>>, %arg4: memref<32x4xf32, #tpu.memory_space<vmem>>, %arg5: memref<4x8xf32, #tpu.memory_space<vmem>>, %arg6: memref<4x8xf32, #tpu.memory_space<vmem>>, %arg7: memref<8x4xf32, #tpu.memory_space<vmem>>, %arg8: memref<2x8xf32, #tpu.memory_space<vmem>>, %arg9: memref<32x16xf32, #tpu.memory_space<vmem>>) attributes {dimension_semantics = [], scalar_prefetch = 0 : i64, scratch_operands = 0 : i64, tpu.core_type = #tpu.core_type<tc>} {
    %c0 = arith.constant 0 : index
    %c0_0 = arith.constant 0 : index
    %0 = vector.load %arg2[%c0, %c0_0] : memref<1x4xf32, #tpu.memory_space<vmem>>, vector<1x4xf32>
    %c0_1 = arith.constant 0 : index
    %c0_2 = arith.constant 0 : index
    %1 = vector.load %arg1[%c0_1, %c0_2] : memref<4x32xf32, #tpu.memory_space<vmem>>, vector<4x32xf32>
    %cst = arith.constant dense<0.000000e+00> : vector<1x32xf32>
    %2 = tpu.matmul %0, %1, %cst {dimension_numbers = #tpu.dot_dimension_numbers<[1], [0], [0], [1], [0, 0, 1, 1], [], []>} : vector<1x4xf32>, vector<4x32xf32>, vector<1x32xf32> -> vector<1x32xf32>
    %c0_3 = arith.constant 0 : index
    %c0_4 = arith.constant 0 : index
    %3 = vector.load %arg0[%c0_3, %c0_4] : memref<8x32xf32, #tpu.memory_space<vmem>>, vector<8x32xf32>
    %cst_5 = arith.constant dense<0.000000e+00> : vector<1x8xf32>
    %4 = tpu.matmul %2, %3, %cst_5 {dimension_numbers = #tpu.dot_dimension_numbers<[1], [1], [0], [0], [0, 0, 1, 0], [], []>} : vector<1x32xf32>, vector<8x32xf32>, vector<1x8xf32> -> vector<1x8xf32>
    %c0_6 = arith.constant 0 : index
    %c0_7 = arith.constant 0 : index
    %5 = vector.load %arg2[%c0_6, %c0_7] : memref<1x4xf32, #tpu.memory_space<vmem>>, vector<1x4xf32>
    %c0_8 = arith.constant 0 : index
    %c0_9 = arith.constant 0 : index
    %6 = vector.load %arg7[%c0_8, %c0_9] : memref<8x4xf32, #tpu.memory_space<vmem>>, vector<8x4xf32>
    %cst_10 = arith.constant dense<0.000000e+00> : vector<1x8xf32>
    %7 = tpu.matmul %5, %6, %cst_10 {dimension_numbers = #tpu.dot_dimension_numbers<[1], [1], [0], [0], [0, 0, 1, 0], [], []>} : vector<1x4xf32>, vector<8x4xf32>, vector<1x8xf32> -> vector<1x8xf32>
    %8 = tpu.concatenate %4, %7 in 0 : vector<1x8xf32>, vector<1x8xf32> -> vector<2x8xf32>
    %c0_11 = arith.constant 0 : index
    %9 = memref.load %arg3[%c0_11] : memref<1xf32, #tpu.memory_space<smem>>
    %10 = vector.broadcast %9 : f32 to vector<2x8xf32>
    %11 = arith.addf %8, %10 : vector<2x8xf32>
    %12 = arith.negf %11 : vector<2x8xf32>
    %13 = math.exp %12 : vector<2x8xf32>
    %cst_12 = arith.constant 1.000000e+00 : f32
    %14 = vector.broadcast %cst_12 : f32 to vector<2x8xf32>
    %15 = arith.addf %14, %13 : vector<2x8xf32>
    %16 = arith.divf %14, %15 : vector<2x8xf32>
    %c0_13 = arith.constant 0 : index
    %c0_14 = arith.constant 0 : index
    %17 = vector.load %arg8[%c0_13, %c0_14] : memref<2x8xf32, #tpu.memory_space<vmem>>, vector<2x8xf32>
    tpu.vector_store %arg8[%c0_13, %c0_14], %16 {strides = array<i32>} : memref<2x8xf32, #tpu.memory_space<vmem>>, vector<2x8xf32>,
    %c0_15 = arith.constant 0 : index
    %c0_16 = arith.constant 0 : index
    %18 = vector.load %arg5[%c0_15, %c0_16] : memref<4x8xf32, #tpu.memory_space<vmem>>, vector<4x8xf32>
    %c0_17 = arith.constant 0 : index
    %c0_18 = arith.constant 0 : index
    %19 = vector.load %arg6[%c0_17, %c0_18] : memref<4x8xf32, #tpu.memory_space<vmem>>, vector<4x8xf32>
    %20 = tpu.concatenate %18, %19 in 1 : vector<4x8xf32>, vector<4x8xf32> -> vector<4x16xf32>
    %c0_19 = arith.constant 0 : index
    %c0_20 = arith.constant 0 : index
    %21 = vector.load %arg4[%c0_19, %c0_20] : memref<32x4xf32, #tpu.memory_space<vmem>>, vector<32x4xf32>
    %cst_21 = arith.constant dense<0.000000e+00> : vector<32x16xf32>
    %22 = tpu.matmul %21, %20, %cst_21 {dimension_numbers = #tpu.dot_dimension_numbers<[1], [0], [0], [1], [0, 0, 1, 1], [], []>} : vector<32x4xf32>, vector<4x16xf32>, vector<32x16xf32> -> vector<32x16xf32>
    %c0_22 = arith.constant 0 : index
    %c0_23 = arith.constant 0 : index
    %23 = vector.load %arg9[%c0_22, %c0_23] : memref<32x16xf32, #tpu.memory_space<vmem>>, vector<32x16xf32>
    tpu.vector_store %arg9[%c0_22, %c0_23], %22 {strides = array<i32>} : memref<32x16xf32, #tpu.memory_space<vmem>>, vector<32x16xf32>,
    return
  }
}

</mosaic_0001>

<bundles_post_ra>
// kernel: smf_forward.1
= control target key start
LH: loop header
LB: loop body
LE: loop exit
PB: predicated region body
PF: predicated region fallthrough
CT: control target
= control target key end

     0   :  { %vm38_vm0 = vcmask 1043456   ;;  %vm34_vm1 = vcmask 31744   ;;  %v458_v0 = vmov 0.0   ;;  %vm459_vm2 = vmmov 0   ;;  %s460_s15 = smov 8   ;;  %s574_s1 = inlined_call_operand.vmem [shape: f32[4,32], index: 1, kind: input, shape index: {}]   ;;  %s575_s2 = inlined_call_operand.vmem [shape: f32[1,4], index: 2, kind: input, shape index: {}]   ;;  %s576_s6 = inlined_call_operand.vmem [shape: f32[4,8], index: 6, kind: input, shape index: {}]   ;;  %s577_s0 = inlined_call_operand.vmem [shape: f32[8,32], index: 0, kind: input, shape index: {}]   ;;  %s578_s4 = inlined_call_operand.vmem [shape: f32[32,4], index: 4, kind: input, shape index: {}]   ;;  %s579_s5 = inlined_call_operand.vmem [shape: f32[4,8], index: 5, kind: input, shape index: {}]   ;;  %s580_s7 = inlined_call_operand.vmem [shape: f32[8,4], index: 7, kind: input, shape index: {}]   ;;  %s581_s9 = inlined_call_operand.vmem [shape: f32[32,16], index: 9, kind: output, shape index: {1}]   ;;  %s582_s3 = inlined_call_operand.<no memory space> [shape: f32[1], index: 3, kind: input, shape index: {}]   ;;  %s583_s8 = inlined_call_operand.vmem [shape: f32[2,8], index: 8, kind: output, shape index: {0}]  }
   0x1   :  { %428 = vmatprep.subr.mxu0 %v458_v0  ;;  %v33_v1 = vld [vmem:[%s574_s1] sm:$0xf]  ;;  %430 = vmatprep.mubr.msk.f32.mxu0 %vm459_vm2, %v458_v0  ;;  %vm113_vm3 = vcmask 261120   ;;  %vm286_vm4 = vcmask 64512   ;;  %v289_v9 = vld [vmem:[%s578_s4 + $0x8] sm:$0xff]  ;;  %v290_v10 = vld [vmem:[%s578_s4 + $0x10] sm:$0xff]  ;;  %v270_v23 = vstv %s582_s3 }
   0x2   :  { %v32_v2 = vld [vmem:[%s575_s2] sm:$0x1]  ;;  %429 = vmatpush3.msk.msra.mxu0 %vm38_vm0, %v33_v1  ;;  %v291_v11 = vld [vmem:[%s578_s4 + $0x18] sm:$0xff]  ;;  %vm392_vm5 = vcmask 130048   ;;  %vm267_vm6 = vcmask 1040384   ;;  %vm278_vm7 = vcmask 58368  }
   0x3   :  { %v281_v3 = vld [vmem:[%s576_s6] sm:$0xf]  ;;  %431 = vmatmul.mubr.msk.f32.vlgmr.msra.gmra.mrb[0].mxu0 %vm34_vm1, %v32_v2  ;;  %433 = vmatprep.subr.mxu0 %v458_v0 }
   0x4   :  { %283 = vrot.lane.b32.xlu0 %v281_v3, %s460_s15  ;;  %435 = vmatprep.mubr.msk.f32.mxu0 %vm459_vm2, %v458_v0  ;;  %v112_v4 = vld [vmem:[%s577_s0] sm:$0xff] }
   0x5   :  { %v288_v5 = vld [vmem:[%s578_s4] sm:$0xff] }
   0x6   :  { %445 = vmatprep.mubr.msk.f32.mxu1 %vm34_vm1, %v288_v5  ;;  %v280_v6 = vld [vmem:[%s579_s5] sm:$0xf] }
   0x7   :  { %v190_v12 = vld [vmem:[%s580_s7] sm:$0xff] }
   0x9   :  { %434 = vmatpush3.xpose.msk.msra.mxu0 %vm113_vm3, %v112_v4 }
   0xa   :  { %438 = vmatprep.subr.mxu0 %v458_v0 }
  0x76   :  { %v284_v7 = vpop.permute.xlu0 %283 }
  0x77   :  { %v287_v8 = vsel %vm286_vm4, %v280_v6, %v284_v7 }
  0x78   :  { %443 = vmatprep.subr.msk.mxu1 %vm38_vm0, %v287_v8 }
  0x79   :  { %444 = vmatpush3.msk.msra.mxu1 %vm38_vm0, %v287_v8 }
  0x7a   :  { %446 = vmatmul.mubr.msk.f32.vlgmr.msra.gmra.mrb[0].mxu1 %vm34_vm1, %v289_v9 }
  0x7b   :  { %448 = vmatprep.mubr.msk.f32.mxu1 %vm34_vm1, %v290_v10 }
  0x7e   :  { %449 = vmatmul.mubr.msk.f32.gmra.mrb[2].mxu1 %vm34_vm1, %v291_v11 }
  0xd6   :  { %v108_v13 = vpop.f32.mrb[0].mxu0 }
  0xd7   :  { %v432_v14 = vpop.f32.mrb[1].mxu0  ;;  %436 = vmatmul.mubr.msk.f32.vlgmr.msra.gmra.mrb[2].mxu0 %vm113_vm3, %v108_v13 }
  0xd8   :  { %439 = vmatpush3.xpose.msk.msra.mxu0 %vm34_vm1, %v190_v12  ;;  %440 = vmatprep.mubr.msk.f32.mxu0 %vm459_vm2, %v458_v0 }
  0xdb   :  { %441 = vmatmul.mubr.msk.f32.vlgmr.msra.gmra.mrb[4].mxu0 %vm34_vm1, %v32_v2 }
 0x14d   :  { %v447_v15 = vpop.f32.mrb[0].mxu1 }
 0x14e   :  { %394 = vst.msk [vmem:[%s581_s9 + $0x8] sm:$0xff] %vm392_vm5, %v447_v15  ;;  %v373_v16 = vpop.f32.mrb[1].mxu1 }
 0x14f   :  { %393 = vst.msk [vmem:[%s581_s9] sm:$0xff] %vm392_vm5, %v373_v16 }
 0x151   :  { %v450_v17 = vpop.f32.mrb[2].mxu1 }
 0x152   :  { %396 = vst.msk [vmem:[%s581_s9 + $0x18] sm:$0xff] %vm392_vm5, %v450_v17  ;;  %v383_v18 = vpop.f32.mrb[3].mxu1 }
 0x153   :  { %395 = vst.msk [vmem:[%s581_s9 + $0x10] sm:$0xff] %vm392_vm5, %v383_v18 }
 0x1aa   :  { %v186_v19 = vpop.f32.mrb[2].mxu0 }
 0x1ab   :  { %v437_v20 = vpop.f32.mrb[3].mxu0 }
 0x1ae   :  { %v260_v21 = vpop.f32.mrb[4].mxu0 }
 0x1af   :  { %v265_v22 = vrot.slane %v260_v21, 7  ;;  %v442_v24 = vpop.f32.mrb[5].mxu0 }
 0x1b1   :  { %v268_v25 = vsel %vm267_vm6, %v186_v19, %v265_v22 }
 0x1b2   :  { %v271_v26 = vadd.f32 %v270_v23, %v268_v25 }
 0x1b4   :  { %v411_v27 = vmul.f32 -1.442695, %v271_v26 }
 0x1b6   :  { %454 = vpow2.f32 %v411_v27 }
 0x1c0   :  { %v455_v28 = vpop.eup %454 }
 0x1c1   :  { %v275_v29 = vadd.f32 1.0, %v455_v28 }
 0x1c3   :  { %456 = vrcp.f32 %v275_v29 }
 0x1cd   :  { %v457_v30 = vpop.eup %456 }
 0x1ce   :  { %279 = vst.msk [vmem:[%s583_s8] sm:$0x3] %vm278_vm7, %v457_v30 }

</bundles_post_ra>
